<compile_context>
chip_gen: v7x
topology: tpu7x:2x2x1
jax: 0.10.0
libtpu: 0.0.40
codegen_flags: <defaults>
</compile_context>

<pallas_src>
import math

import jax
import jax.numpy as jnp
from jax.experimental import pallas as pl
from jax.experimental.pallas import tpu as pltpu


_LANES = 128
_SUBLANE_MULT = {4: 8, 2: 16, 1: 32}     # itemsize -> sublane packing multiple
_BLOCK_BYTES = 2 * 1024 * 1024           # ~2 MiB per (double-buffered) tile


# ---------------------------------------------------------------- kernel ----
def _copy_kernel(x_ref, o_ref):
    o_ref[...] = x_ref[...]


# --------------------------------------------------------------- helpers ----
def _resolve_shape(total, shape):
    """torch.view-style shape resolution (supports a single -1)."""
    shape = tuple(int(s) for s in shape)
    if shape.count(-1) > 1:
        raise ValueError("only one dimension may be -1")
    if -1 in shape:
        idx = shape.index(-1)
        known = math.prod(s for i, s in enumerate(shape) if i != idx)
        if known == 0 or total % known != 0:
            raise ValueError(f"cannot view {total} elements as {shape}")
        shape = shape[:idx] + (total // known,) + shape[idx + 1:]
    if math.prod(shape) != total:
        raise ValueError(f"cannot view {total} elements as {shape}")
    return shape


def _pick_block_rows(rows, itemsize):
    """Sublane-aligned row-block capped at ~_BLOCK_BYTES per buffer."""
    mult = _SUBLANE_MULT.get(itemsize, 8)
    cap_rows = max(mult, (_BLOCK_BYTES // (itemsize * _LANES)) // mult * mult)
    if rows <= cap_rows:
        return rows                       # single block == full array: legal
    return cap_rows                       # multiple of (8,128); tail is masked


# --------------------------------------------------------------- wrapper ----
def reshape_tensor_forward(x, shape):
    """Pallas equivalent of ReshapeTensor(shape)(x) == x.view(shape)."""
    total = int(math.prod(x.shape))
    target = _resolve_shape(total, shape)

    if total == 0:
        return jnp.reshape(x, target)     # nothing to copy

    # Lane-dense presentation of the flat, row-major element stream.
    if total % _LANES == 0:
        rows, cols = total // _LANES, _LANES
    else:
        # TODO(synk): ragged element counts use one full-array block; fine for
        # small inputs, would need padding/masking for very large ragged sizes.
        rows, cols = 1, total
    x2d = jnp.reshape(x, (rows, cols))    # free: row-major metadata reshape

    block_rows = _pick_block_rows(rows, jnp.dtype(x.dtype).itemsize)
    grid = (pl.cdiv(rows, block_rows),)

    out2d = pl.pallas_call(
        _copy_kernel,
        out_shape=jax.ShapeDtypeStruct((rows, cols), x.dtype),
        grid=grid,
        in_specs=[pl.BlockSpec((block_rows, cols), lambda i: (i, 0))],
        out_specs=pl.BlockSpec((block_rows, cols), lambda i: (i, 0)),
        compiler_params=pltpu.CompilerParams(
            dimension_semantics=("parallel",)),
    )(x2d)

    return jnp.reshape(out2d, target)     # free: row-major metadata reshape


# ------------------------------------------------------------------ main ----
if __name__ == "__main__":
    key = jax.random.PRNGKey(0)
    k0, k1, k2 = jax.random.split(key, 3)

    # Main case: matches the PyTorch module  ReshapeTensor((2, 4, 256)).
    x = jax.random.normal(k0, (2, 4, 16, 16), dtype=jnp.float32)
    target_shape = (2, 4, 256)
    out = jax.block_until_ready(reshape_tensor_forward(x, target_shape))
    ref = jnp.reshape(x, target_shape)
    assert out.shape == ref.shape and out.dtype == ref.dtype
    assert bool(jnp.all(out == ref)), "reshape copy mismatch"

    # Secondary case: -1 inference + element count not a multiple of 128
    # (exercises the full-array-block fallback path).
    x2 = jax.random.normal(k1, (3, 5, 7), dtype=jnp.float32)
    out2 = jax.block_until_ready(reshape_tensor_forward(x2, (-1, 21)))
    ref2 = jnp.reshape(x2, (5, 21))
    assert out2.shape == ref2.shape
    assert bool(jnp.all(out2 == ref2)), "fallback reshape copy mismatch"

    # Third case: bf16 (16-row sublane packing) with a row count that is not a
    # power-of-two multiple of the sublane multiple.
    x3 = jax.random.normal(k2, (24, 128), dtype=jnp.bfloat16)
    out3 = jax.block_until_ready(reshape_tensor_forward(x3, (3, 8, 128)))
    ref3 = jnp.reshape(x3, (3, 8, 128))
    assert out3.shape == ref3.shape and out3.dtype == ref3.dtype
    assert bool(jnp.all(out3 == ref3)), "bf16 reshape copy mismatch"

    print("KERNEL_OK")
</pallas_src>

<mosaic_0001>
module attributes {stable_mosaic.version = 11 : i64} {
  func.func @_copy_kernel(%arg0: i32, %arg1: memref<16x128xf32, #tpu.memory_space<vmem>>, %arg2: memref<16x128xf32, #tpu.memory_space<vmem>>) attributes {dimension_semantics = [#tpu.dimension_semantics<parallel>], iteration_bounds = array<i64: 1>, scalar_prefetch = 0 : i64, scratch_operands = 0 : i64, tpu.core_type = #tpu.core_type<tc>, window_params = [{transform_indices = @transform_0, window_bounds = array<i64: 16, 128>}, {transform_indices = @transform_1, window_bounds = array<i64: 16, 128>}]} {
    %c0 = arith.constant 0 : index
    %c0_0 = arith.constant 0 : index
    %0 = vector.load %arg1[%c0, %c0_0] : memref<16x128xf32, #tpu.memory_space<vmem>>, vector<16x128xf32>
    %c0_1 = arith.constant 0 : index
    %c0_2 = arith.constant 0 : index
    %1 = vector.load %arg2[%c0_1, %c0_2] : memref<16x128xf32, #tpu.memory_space<vmem>>, vector<16x128xf32>
    tpu.vector_store %arg2[%c0_1, %c0_2], %0 {strides = array<i32>} : memref<16x128xf32, #tpu.memory_space<vmem>>, vector<16x128xf32>,
    return
  }
  func.func @transform_0(%arg0: i32) -> (i32, i32) {
    %c0_i32 = arith.constant 0 : i32
    %c0_i32_0 = arith.constant 0 : i32
    return %arg0, %c0_i32 : i32, i32
  }
  func.func @transform_1(%arg0: i32) -> (i32, i32) {
    %c0_i32 = arith.constant 0 : i32
    %c0_i32_0 = arith.constant 0 : i32
    return %arg0, %c0_i32 : i32, i32
  }
}

</mosaic_0001>

<bundles_post_ra>
// kernel: tpu_custom_call.1
= control target key start
LH: loop header
LB: loop body
LE: loop exit
PB: predicated region body
PF: predicated region fallthrough
CT: control target
= control target key end

     0   :  { %6 = vsyncpa [#allocation3], 0  ;;  %s134_s0 = inlined_call_operand.hbm [shape: f32[16,128], index: 0, kind: input, shape index: {}]   ;;  %s135_s1 = inlined_call_operand.hbm [shape: f32[16,128], index: 1, kind: output, shape index: {}]  }
   0x1   :  { %7 = vsyncpa [#allocation4], 0  ;;  %s96_s6 = smov [#allocation2]   ;;  %s48_s10 = scalar_lea.hbm %s134_s0, 256 }
   0x2   :  { %s13_s7 = sshll.u32 %s96_s6, 4  ;;  %p49_p0 = scmp.ne.s32.totalorder %s134_s0, %s48_s10  ;;  %s14_s7 = int_to_ptr.vmem [resolvable:$true] %s13_s7 }
   0x3   :  { %p52_p1 = scmp.lt.u32.totalorder %s48_s10, %s134_s0 }
   0x5   :  { %p54_p2 = pnand %p52_p1, %p49_p0 }
   0x7   :  { %57 = shalt.err (!%p54_p2)
}
   0x8   :  { %s58_s15 = scalar_lea.vmem %s14_s7, 256  ;;  %p63_p4 = scmp.lt.s32.totalorder %s14_s7, %s14_s7 }
   0x9   :  { %p59_p3 = scmp.ne.s32.totalorder %s14_s7, %s58_s15  ;;  %p64_p5 = scmp.lt.s32.totalorder %s58_s15, %s58_s15 }
   0xb   :  { %p65_p6 = por %p64_p5, %p63_p4 }
   0xd   :  { %p66_p7 = pnand %p65_p6, %p59_p3 }
   0xf   :  { %69 = shalt.err (!%p66_p7)
}
  0x10   :  { %s97_s16 = smov 128   ;;  %s98_s17 = smov 8  }
  0x11   :  { %19 = dma.hbm_to_vmem [thread:$0]  %s134_s0, 256, %s14_s7, [#allocation3], %s97_s16, %s97_s16, %s98_s17  }
  0x12   :  { %92 = dma.done.wait [#allocation3], 256  }
  0x13   :  { %93 = vsyncadd [#allocation3], 4294967040  ;;  %s99_s20 = smov [#allocation5]   ;;  %v23_v0 = vld [vmem:[#allocation2] sm:$0xff]  ;;  %v24_v1 = vld [vmem:[#allocation2 + $0x8] sm:$0xff] }
  0x14   :  { %s32_s21 = sshll.u32 %s99_s20, 4  ;;  %25 = vst [vmem:[#allocation5] sm:$0xff] %v23_v0  ;;  %26 = vst [vmem:[#allocation5 + $0x8] sm:$0xff] %v24_v1  ;;  %s33_s21 = int_to_ptr.vmem [resolvable:$true] %s32_s21 }
  0x15   :  { %s70_s22 = scalar_lea.vmem %s33_s21, 256  ;;  %p75_p9 = scmp.lt.s32.totalorder %s33_s21, %s33_s21 }
  0x16   :  { %p71_p8 = scmp.ne.s32.totalorder %s33_s21, %s70_s22  ;;  %p76_p10 = scmp.lt.s32.totalorder %s70_s22, %s70_s22 }
  0x18   :  { %p77_p11 = por %p76_p10, %p75_p9 }
  0x1a   :  { %p78_p12 = pnand %p77_p11, %p71_p8 }
  0x1c   :  { %81 = shalt.err (!%p78_p12)
}
  0x1d   :  { %s82_s0 = scalar_lea.hbm %s135_s1, 256 }
  0x1e   :  { %p83_p13 = scmp.ne.s32.totalorder %s135_s1, %s82_s0  ;;  %p86_p0 = scmp.lt.u32.totalorder %s82_s0, %s135_s1 }
  0x20   :  { %p88_p1 = pnand %p86_p0, %p83_p13 }
  0x22   :  { %91 = shalt.err (!%p88_p1)
}
  0x23   :  { %38 = dma.vmem_to_hbm [thread:$0]  %s33_s21, 256, %s135_s1, [#allocation4], %s97_s16, %s97_s16, %s98_s17  }
  0x24   :  { %94 = dma.done.wait [#allocation4], 256  }
  0x25   :  { %95 = vsyncadd [#allocation4], 4294967040 }
  0x26   :  { %42 = vsyncpa [#allocation3], 1 }
  0x27   :  { %43 = vsyncpa [#allocation4], 1 }

</bundles_post_ra>
